<compile_context>
chip_gen: v7x
topology: tpu7x:2x2x1
jax: 0.10.0
libtpu: 0.0.40
codegen_flags: <defaults>
</compile_context>

<pallas_src>
import jax
import jax.numpy as jnp
import numpy as np
from jax.experimental import pallas as pl
from jax.experimental.pallas import tpu as pltpu


def _add_attention_kernel(x_ref, wt_ref, wx_ref, bh_ref, wa_ref, v_ref, a_ref):
    x = x_ref[...]                                   # (BB, T, D) f32
    BB, T, D = x.shape
    H = wx_ref.shape[1]

    # Key projection for every (batch, time) row as ONE long-M MXU matmul.
    # (The (BB, T, D) <-> (BB*T, D) reshapes are layout-free for T == 8.)
    k = jnp.dot(x.reshape(BB * T, D), wx_ref[...],
                preferred_element_type=jnp.float32).reshape(BB, T, H)

    # Query from the last timestep only: (BB, D) @ (D, H).
    q = jnp.dot(x[:, T - 1, :], wt_ref[...],
                preferred_element_type=jnp.float32)          # (BB, H)

    h = jnp.tanh(k + q[:, None, :] + bh_ref[...])            # (BB, T, H)

    # e = h @ Wa done as a VPU multiply + lane reduction (Wa passed as a
    # (1, H) row).  The scalar bias ba is omitted: softmax is shift invariant.
    e = jnp.sum(h * wa_ref[...], axis=-1, keepdims=True)     # (BB, T, 1)

    # Softmax over the time axis.
    m = jnp.max(e, axis=1, keepdims=True)                    # (BB, 1, 1)
    p = jnp.exp(e - m)
    a = p / jnp.sum(p, axis=1, keepdims=True)                # (BB, T, 1)

    # Context vector: broadcast-multiply + reduce over time instead of a
    # degenerate (1, T) @ (T, D) matmul per batch row.
    v_ref[...] = jnp.sum(a * x, axis=1)                      # (BB, D)
    a_ref[...] = a.reshape(BB, T)                            # (BB, T)


def _round_up(n, m):
    return ((n + m - 1) // m) * m


def _choose_block_b(T, D, H, budget_bytes=24 * 1024 * 1024):
    """Largest batch block fitting the VMEM budget (f32, lane-padded to 128,
    x double-buffered plus k/h/temporaries), rounded down to a multiple of 8.
    Budget leaves headroom under the 32 MiB scoped cap (v7x has 64 MiB phys)."""
    d_pad = _round_up(D, 128)
    h_pad = _round_up(H, 128)
    per_row = 4 * T * (3 * d_pad + 3 * h_pad)     # rough bytes per batch row
    bb = max(8, min(1024, budget_bytes // max(per_row, 1)))
    return (bb // 8) * 8


def single_attention_add(x, Wt, Wx, bh, Wa, ba=None, *, block_b=None):
    """Forward of SingleAttention('add', time_aware=False, use_demographic=False).

    x: (B, T, D) f32.  Wt, Wx: (D, H).  bh: (H,).  Wa: (H, 1).
    ba: (1,) accepted for API parity but unused (softmax(e + ba) == softmax(e)).
    Returns (v, a): v (B, D), a (B, T).
    """
    del ba  # mathematically a no-op before the softmax
    x = jnp.asarray(x, jnp.float32)
    B, T, D = x.shape
    H = Wt.shape[1]

    if block_b is None:
        block_b = _choose_block_b(T, D, H)
    BB = _round_up(min(block_b, _round_up(B, 8)), 8)
    B_pad = _round_up(B, BB)
    if B_pad != B:
        x = jnp.pad(x, ((0, B_pad - B), (0, 0), (0, 0)))   # zero rows -> finite garbage, sliced off

    wt = jnp.asarray(Wt, jnp.float32)
    wx = jnp.asarray(Wx, jnp.float32)
    bh_row = jnp.asarray(bh, jnp.float32).reshape(1, H)
    wa_row = jnp.asarray(Wa, jnp.float32).reshape(1, H)     # (H, 1) -> (1, H) row

    grid = (B_pad // BB,)
    grid_spec = pltpu.PrefetchScalarGridSpec(
        num_scalar_prefetch=0,
        grid=grid,
        in_specs=[
            pl.BlockSpec((BB, T, D), lambda b: (b, 0, 0)),   # x, batch-blocked
            # Resident weight operands (constant index_map).  Marking them
            # pipeline_mode=pl.Buffered(1) would save the redundant second
            # buffer; omitted for portability across jax versions.
            pl.BlockSpec((D, H), lambda b: (0, 0)),          # Wt
            pl.BlockSpec((D, H), lambda b: (0, 0)),          # Wx
            pl.BlockSpec((1, H), lambda b: (0, 0)),          # bh row
            pl.BlockSpec((1, H), lambda b: (0, 0)),          # Wa row
        ],
        out_specs=[
            pl.BlockSpec((BB, D), lambda b: (b, 0)),         # v
            pl.BlockSpec((BB, T), lambda b: (b, 0)),         # a
        ],
    )

    v_pad, a_pad = pl.pallas_call(
        _add_attention_kernel,
        out_shape=(
            jax.ShapeDtypeStruct((B_pad, D), jnp.float32),
            jax.ShapeDtypeStruct((B_pad, T), jnp.float32),
        ),
        grid_spec=grid_spec,
        compiler_params=pltpu.CompilerParams(
            dimension_semantics=("parallel",),       # shards batch blocks over v7x's 2 TCs
            vmem_limit_bytes=32 * 1024 * 1024,       # explicit scoped-VMEM budget
        ),
    )(x, wt, wx, bh_row, wa_row)

    return v_pad[:B], a_pad[:B]


def _reference(x, Wt, Wx, bh, Wa, ba):
    """Pure-JAX replica of the PyTorch forward ('add' branch).

    q/k use jnp.matmul (same MXU precision behaviour as the in-kernel dots);
    the H->1 scoring projection and the a @ input contraction are written
    elementwise so both sides of the comparison evaluate them in exact f32
    (the kernel computes them on the VPU, off the MXU).  Mathematically this
    is exactly the module's forward.
    """
    q = jnp.matmul(x[:, -1, :], Wt)[:, None, :]              # (B, 1, H)
    k = jnp.matmul(x, Wx)                                    # (B, T, H)
    h = jnp.tanh(q + k + bh)                                 # (B, T, H)
    e = jnp.sum(h * Wa.reshape(1, 1, -1), axis=-1) + ba      # (B, T)
    a = jax.nn.softmax(e, axis=1)                            # (B, T)
    v = jnp.sum(a[:, :, None] * x, axis=1)                   # (B, D)
    return v, a


def _kaiming_uniform(key, shape, a=np.sqrt(5)):
    # Deterministic stand-in for nn.init.kaiming_uniform_(a=sqrt(5)).
    fan_in = shape[0]
    gain = np.sqrt(2.0 / (1.0 + a * a))
    bound = gain * np.sqrt(3.0 / fan_in)
    return jax.random.uniform(key, shape, jnp.float32, -bound, bound)


if __name__ == "__main__":
    B, T, D, H = 2, 8, 16, 32   # batch, time_step, attention_input_dim, attention_hidden_dim

    key = jax.random.PRNGKey(0)
    kx, kwt, kwx, kwa, kbh, kba, kx2 = jax.random.split(key, 7)

    x = jax.random.normal(kx, (B, T, D), jnp.float32)
    Wt = _kaiming_uniform(kwt, (D, H))
    Wx = _kaiming_uniform(kwx, (D, H))
    Wa = _kaiming_uniform(kwa, (H, 1))
    bh = 0.1 * jax.random.normal(kbh, (H,), jnp.float32)
    ba = 0.3 * jax.random.normal(kba, (1,), jnp.float32)   # nonzero: kernel drops it (shift-invariant)

    v, a = single_attention_add(x, Wt, Wx, bh, Wa, ba)
    jax.block_until_ready((v, a))
    v_ref, a_ref = _reference(x, Wt, Wx, bh, Wa, ba)
    np.testing.assert_allclose(np.asarray(v), np.asarray(v_ref), rtol=1e-5, atol=1e-5)
    np.testing.assert_allclose(np.asarray(a), np.asarray(a_ref), rtol=1e-5, atol=1e-5)

    # Second case: batch not a multiple of the block -> exercises batch padding
    # and a multi-step (parallel) grid.
    B2 = 20
    x2 = jax.random.normal(kx2, (B2, T, D), jnp.float32)
    v2, a2 = single_attention_add(x2, Wt, Wx, bh, Wa, ba, block_b=8)
    jax.block_until_ready((v2, a2))
    v2_ref, a2_ref = _reference(x2, Wt, Wx, bh, Wa, ba)
    np.testing.assert_allclose(np.asarray(v2), np.asarray(v2_ref), rtol=1e-5, atol=1e-5)
    np.testing.assert_allclose(np.asarray(a2), np.asarray(a2_ref), rtol=1e-5, atol=1e-5)

    print("KERNEL_OK")
</pallas_src>

<mosaic_0001>
module attributes {stable_mosaic.version = 11 : i64} {
  func.func @_add_attention_kernel(%arg0: i32, %arg1: memref<8x8x16xf32, #tpu.memory_space<vmem>>, %arg2: memref<16x32xf32, #tpu.memory_space<vmem>>, %arg3: memref<16x32xf32, #tpu.memory_space<vmem>>, %arg4: memref<1x32xf32, #tpu.memory_space<vmem>>, %arg5: memref<1x32xf32, #tpu.memory_space<vmem>>, %arg6: memref<8x16xf32, #tpu.memory_space<vmem>>, %arg7: memref<8x8xf32, #tpu.memory_space<vmem>>) attributes {dimension_semantics = [#tpu.dimension_semantics<parallel>], iteration_bounds = array<i64: 1>, scalar_prefetch = 0 : i64, scratch_operands = 0 : i64, tpu.core_type = #tpu.core_type<tc>, window_params = [{transform_indices = @transform_0, window_bounds = array<i64: 8, 8, 16>}, {pipeline_mode = #tpu.pipeline_mode<synchronous>, transform_indices = @transform_1, window_bounds = array<i64: 16, 32>}, {pipeline_mode = #tpu.pipeline_mode<synchronous>, transform_indices = @transform_2, window_bounds = array<i64: 16, 32>}, {pipeline_mode = #tpu.pipeline_mode<synchronous>, transform_indices = @transform_3, window_bounds = array<i64: 1, 32>}, {pipeline_mode = #tpu.pipeline_mode<synchronous>, transform_indices = @transform_4, window_bounds = array<i64: 1, 32>}, {transform_indices = @transform_5, window_bounds = array<i64: 8, 16>}, {transform_indices = @transform_6, window_bounds = array<i64: 8, 8>}]} {
    %c0 = arith.constant 0 : index
    %c0_0 = arith.constant 0 : index
    %c0_1 = arith.constant 0 : index
    %0 = vector.load %arg1[%c0, %c0_0, %c0_1] : memref<8x8x16xf32, #tpu.memory_space<vmem>>, vector<8x8x16xf32>
    %1 = vector.shape_cast %0 : vector<8x8x16xf32> to vector<64x16xf32>
    %c0_2 = arith.constant 0 : index
    %c0_3 = arith.constant 0 : index
    %2 = vector.load %arg3[%c0_2, %c0_3] : memref<16x32xf32, #tpu.memory_space<vmem>>, vector<16x32xf32>
    %cst = arith.constant dense<0.000000e+00> : vector<64x32xf32>
    %3 = tpu.matmul %1, %2, %cst {dimension_numbers = #tpu.dot_dimension_numbers<[1], [0], [0], [1], [0, 0, 1, 1], [], []>} : vector<64x16xf32>, vector<16x32xf32>, vector<64x32xf32> -> vector<64x32xf32>
    %4 = vector.shape_cast %3 : vector<64x32xf32> to vector<8x8x32xf32>
    %5 = vector.extract_strided_slice %0 {offsets = [0, 7, 0], sizes = [8, 1, 16], strides = [1, 1, 1]} : vector<8x8x16xf32> to vector<8x1x16xf32>
    %6 = vector.shape_cast %5 : vector<8x1x16xf32> to vector<8x16xf32>
    %c0_4 = arith.constant 0 : index
    %c0_5 = arith.constant 0 : index
    %7 = vector.load %arg2[%c0_4, %c0_5] : memref<16x32xf32, #tpu.memory_space<vmem>>, vector<16x32xf32>
    %cst_6 = arith.constant dense<0.000000e+00> : vector<8x32xf32>
    %8 = tpu.matmul %6, %7, %cst_6 {dimension_numbers = #tpu.dot_dimension_numbers<[1], [0], [0], [1], [0, 0, 1, 1], [], []>} : vector<8x16xf32>, vector<16x32xf32>, vector<8x32xf32> -> vector<8x32xf32>
    %9 = vector.shape_cast %8 : vector<8x32xf32> to vector<8x1x32xf32>
    %10 = vector.broadcast %9 : vector<8x1x32xf32> to vector<8x8x32xf32>
    %11 = arith.addf %4, %10 : vector<8x8x32xf32>
    %c0_7 = arith.constant 0 : index
    %c0_8 = arith.constant 0 : index
    %12 = vector.load %arg4[%c0_7, %c0_8] : memref<1x32xf32, #tpu.memory_space<vmem>>, vector<1x32xf32>
    %13 = vector.shape_cast %12 : vector<1x32xf32> to vector<1x1x32xf32>
    %14 = vector.broadcast %13 : vector<1x1x32xf32> to vector<8x8x32xf32>
    %15 = arith.addf %11, %14 : vector<8x8x32xf32>
    %16 = math.tanh %15 : vector<8x8x32xf32>
    %c0_9 = arith.constant 0 : index
    %c0_10 = arith.constant 0 : index
    %17 = vector.load %arg5[%c0_9, %c0_10] : memref<1x32xf32, #tpu.memory_space<vmem>>, vector<1x32xf32>
    %18 = vector.shape_cast %17 : vector<1x32xf32> to vector<1x1x32xf32>
    %19 = vector.broadcast %18 : vector<1x1x32xf32> to vector<8x8x32xf32>
    %20 = arith.mulf %16, %19 : vector<8x8x32xf32>
    %cst_11 = arith.constant dense<0.000000e+00> : vector<8x8xf32>
    %21 = vector.multi_reduction <add>, %20, %cst_11 [2] : vector<8x8x32xf32> to vector<8x8xf32>
    %22 = vector.shape_cast %21 : vector<8x8xf32> to vector<8x8x1xf32>
    %cst_12 = arith.constant dense<0xFF800000> : vector<8x1xf32>
    %23 = vector.multi_reduction <maximumf>, %22, %cst_12 [1] : vector<8x8x1xf32> to vector<8x1xf32>
    %24 = vector.shape_cast %23 : vector<8x1xf32> to vector<8x1x1xf32>
    %25 = vector.broadcast %24 : vector<8x1x1xf32> to vector<8x8x1xf32>
    %26 = arith.subf %22, %25 : vector<8x8x1xf32>
    %27 = math.exp %26 : vector<8x8x1xf32>
    %cst_13 = arith.constant dense<0.000000e+00> : vector<8x1xf32>
    %28 = vector.multi_reduction <add>, %27, %cst_13 [1] : vector<8x8x1xf32> to vector<8x1xf32>
    %29 = vector.shape_cast %28 : vector<8x1xf32> to vector<8x1x1xf32>
    %30 = vector.broadcast %29 : vector<8x1x1xf32> to vector<8x8x1xf32>
    %31 = arith.divf %27, %30 : vector<8x8x1xf32>
    %32 = vector.broadcast %31 : vector<8x8x1xf32> to vector<8x8x16xf32>
    %33 = arith.mulf %32, %0 : vector<8x8x16xf32>
    %cst_14 = arith.constant dense<0.000000e+00> : vector<8x16xf32>
    %34 = vector.multi_reduction <add>, %33, %cst_14 [1] : vector<8x8x16xf32> to vector<8x16xf32>
    %c0_15 = arith.constant 0 : index
    %c0_16 = arith.constant 0 : index
    %35 = vector.load %arg6[%c0_15, %c0_16] : memref<8x16xf32, #tpu.memory_space<vmem>>, vector<8x16xf32>
    tpu.vector_store %arg6[%c0_15, %c0_16], %34 {strides = array<i32>} : memref<8x16xf32, #tpu.memory_space<vmem>>, vector<8x16xf32>,
    %36 = vector.shape_cast %31 : vector<8x8x1xf32> to vector<8x8xf32>
    %c0_17 = arith.constant 0 : index
    %c0_18 = arith.constant 0 : index
    %37 = vector.load %arg7[%c0_17, %c0_18] : memref<8x8xf32, #tpu.memory_space<vmem>>, vector<8x8xf32>
    tpu.vector_store %arg7[%c0_17, %c0_18], %36 {strides = array<i32>} : memref<8x8xf32, #tpu.memory_space<vmem>>, vector<8x8xf32>,
    return
  }
  func.func @transform_0(%arg0: i32) -> (i32, i32, i32) {
    %c0_i32 = arith.constant 0 : i32
    %c0_i32_0 = arith.constant 0 : i32
    %c0_i32_1 = arith.constant 0 : i32
    return %arg0, %c0_i32, %c0_i32_0 : i32, i32, i32
  }
  func.func @transform_1(%arg0: i32) -> (i32, i32) {
    %c0_i32 = arith.constant 0 : i32
    %c0_i32_0 = arith.constant 0 : i32
    %c0_i32_1 = arith.constant 0 : i32
    return %c0_i32, %c0_i32_0 : i32, i32
  }
  func.func @transform_2(%arg0: i32) -> (i32, i32) {
    %c0_i32 = arith.constant 0 : i32
    %c0_i32_0 = arith.constant 0 : i32
    %c0_i32_1 = arith.constant 0 : i32
    return %c0_i32, %c0_i32_0 : i32, i32
  }
  func.func @transform_3(%arg0: i32) -> (i32, i32) {
    %c0_i32 = arith.constant 0 : i32
    %c0_i32_0 = arith.constant 0 : i32
    %c0_i32_1 = arith.constant 0 : i32
    return %c0_i32, %c0_i32_0 : i32, i32
  }
  func.func @transform_4(%arg0: i32) -> (i32, i32) {
    %c0_i32 = arith.constant 0 : i32
    %c0_i32_0 = arith.constant 0 : i32
    %c0_i32_1 = arith.constant 0 : i32
    return %c0_i32, %c0_i32_0 : i32, i32
  }
  func.func @transform_5(%arg0: i32) -> (i32, i32) {
    %c0_i32 = arith.constant 0 : i32
    %c0_i32_0 = arith.constant 0 : i32
    return %arg0, %c0_i32 : i32, i32
  }
  func.func @transform_6(%arg0: i32) -> (i32, i32) {
    %c0_i32 = arith.constant 0 : i32
    %c0_i32_0 = arith.constant 0 : i32
    return %arg0, %c0_i32 : i32, i32
  }
}

</mosaic_0001>

<bundles_post_ra>
// kernel: tpu_custom_call.1
= control target key start
LH: loop header
LB: loop body
LE: loop exit
PB: predicated region body
PF: predicated region fallthrough
CT: control target
= control target key end

     0   :  { %12 = vsyncpa [#allocation3], 0  ;;  %s1266_s0 = inlined_call_operand.hbm [shape: f32[8,8,16], index: 0, kind: input, shape index: {}]   ;;  %s1267_s1 = inlined_call_operand.hbm [shape: f32[16,32], index: 1, kind: input, shape index: {}]   ;;  %s1268_s2 = inlined_call_operand.hbm [shape: f32[16,32], index: 2, kind: input, shape index: {}]   ;;  %s1269_s3 = inlined_call_operand.vmem [shape: f32[1,32], index: 3, kind: input, shape index: {}]   ;;  %s1270_s4 = inlined_call_operand.vmem [shape: f32[1,32], index: 4, kind: input, shape index: {}]   ;;  %s1271_s5 = inlined_call_operand.hbm [shape: f32[8,16], index: 5, kind: output, shape index: {0}]   ;;  %s1272_s6 = inlined_call_operand.hbm [shape: f32[8,8], index: 6, kind: output, shape index: {1}]  }
   0x1   :  { %13 = vsyncpa [#allocation6], 0 }
   0x2   :  { %14 = vsyncpa [#allocation4], 0 }
   0x3   :  { %15 = vsyncpa [#allocation10], 0  ;;  %s993_s21 = smov [#allocation5]   ;;  %s994_s23 = smov [#allocation2]  }
   0x4   :  { %s33_s22 = sshll.u32 %s993_s21, 4  ;;  %s21_s24 = sshll.u32 %s994_s23, 4  ;;  %s34_s22 = int_to_ptr.vmem [resolvable:$true] %s33_s22  ;;  %s1039_s24 = int_to_ptr.vmem [resolvable:$true] %s21_s24 }
   0x5   :  { %s875_s27 = scalar_lea.hbm %s1267_s1, 256 }
   0x6   :  { %p876_p0 = scmp.ne.s32.totalorder %s1267_s1, %s875_s27  ;;  %p879_p1 = scmp.lt.u32.totalorder %s875_s27, %s1267_s1 }
   0x8   :  { %p881_p2 = pnand %p879_p1, %p876_p0 }
   0xa   :  { %884 = shalt.err (!%p881_p2)
}
   0xb   :  { %s885_s8 = scalar_lea.vmem %s34_s22, 256  ;;  %p890_p4 = scmp.lt.s32.totalorder %s34_s22, %s34_s22 }
   0xc   :  { %p886_p3 = scmp.ne.s32.totalorder %s34_s22, %s885_s8  ;;  %p891_p5 = scmp.lt.s32.totalorder %s885_s8, %s885_s8 }
   0xe   :  { %p892_p6 = por %p891_p5, %p890_p4 }
  0x10   :  { %p893_p7 = pnand %p892_p6, %p886_p3 }
  0x12   :  { %896 = shalt.err (!%p893_p7)
}
  0x13   :  { %s995_s9 = smov 128   ;;  %s996_s10 = smov 8  }
  0x14   :  { %39 = dma.hbm_to_vmem [thread:$0]  %s1267_s1, 256, %s34_s22, [#allocation6], %s995_s9, %s995_s9, %s996_s10  }
  0x15   :  { %s897_s15 = scalar_lea.hbm %s1266_s0, 1024 }
  0x16   :  { %p898_p8 = scmp.ne.s32.totalorder %s1266_s0, %s897_s15  ;;  %p901_p9 = scmp.lt.u32.totalorder %s897_s15, %s1266_s0 }
  0x18   :  { %p903_p10 = pnand %p901_p9, %p898_p8 }
  0x1a   :  { %906 = shalt.err (!%p903_p10)
}
  0x1b   :  { %s907_s20 = scalar_lea.vmem %s1039_s24, 1024  ;;  %p912_p12 = scmp.lt.s32.totalorder %s1039_s24, %s1039_s24 }
  0x1c   :  { %p908_p11 = scmp.ne.s32.totalorder %s1039_s24, %s907_s20  ;;  %p913_p13 = scmp.lt.s32.totalorder %s907_s20, %s907_s20 }
  0x1e   :  { %p914_p0 = por %p913_p13, %p912_p12 }
  0x20   :  { %p915_p1 = pnand %p914_p0, %p908_p11 }
  0x22   :  { %918 = shalt.err (!%p915_p1)
}
  0x23   :  { %27 = dma.hbm_to_vmem [thread:$0]  %s1266_s0, 1024, %s1039_s24, [#allocation3], %s995_s9, %s995_s9, %s996_s10  }
  0x24   :  { %s997_s22 = smov [#allocation7]   ;;  %s919_s27 = scalar_lea.hbm %s1268_s2, 256 }
  0x25   :  { %s45_s23 = sshll.u32 %s997_s22, 4  ;;  %p920_p2 = scmp.ne.s32.totalorder %s1268_s2, %s919_s27  ;;  %s46_s23 = int_to_ptr.vmem [resolvable:$true] %s45_s23 }
  0x26   :  { %p923_p3 = scmp.lt.u32.totalorder %s919_s27, %s1268_s2 }
  0x28   :  { %p925_p4 = pnand %p923_p3, %p920_p2 }
  0x2a   :  { %928 = shalt.err (!%p925_p4)
}
  0x2b   :  { %s929_s8 = scalar_lea.vmem %s46_s23, 256  ;;  %p934_p6 = scmp.lt.s32.totalorder %s46_s23, %s46_s23 }
  0x2c   :  { %p930_p5 = scmp.ne.s32.totalorder %s46_s23, %s929_s8  ;;  %p935_p7 = scmp.lt.s32.totalorder %s929_s8, %s929_s8 }
  0x2e   :  { %p936_p8 = por %p935_p7, %p934_p6 }
  0x30   :  { %p937_p9 = pnand %p936_p8, %p930_p5 }
  0x32   :  { %940 = shalt.err (!%p937_p9)
}
  0x33   :  { %51 = dma.hbm_to_vmem [thread:$0]  %s1268_s2, 256, %s46_s23, [#allocation6], %s995_s9, %s995_s9, %s996_s10  }
  0x34   :  { %985 = dma.done.wait [#allocation3], 1024  }
  0x35   :  { %986 = vsyncadd [#allocation3], 4294966272 }
  0x36   :  { %987 = dma.done.wait [#allocation6], 512  }
  0x37   :  { %988 = vsyncadd [#allocation6], 4294966784  ;;  %vm75_vm0 = vcmask 130048   ;;  %v73_v0 = vld [vmem:[#allocation7] sm:$0xff]  ;;  %v74_v1 = vld [vmem:[#allocation7 + $0x8] sm:$0xff]  ;;  %vm209_vm1 = vcmask 1041409   ;;  %v305_v30 = vlaneseq }
  0x38   :  { %v1091_v2 = vld [vmem:[#allocation2 + $0x30] sm:$0xff]  ;;  %v807_v3 = vpack.c.bf16 %v74_v1, %v73_v0  ;;  %v205_v4 = vld [vmem:[#allocation5] sm:$0xff]  ;;  %v206_v5 = vld [vmem:[#allocation5 + $0x8] sm:$0xff]  ;;  %vm212_vm2 = vcmask 1042434   ;;  %vm215_vm3 = vcmask 1043459   ;;  %v998_v19 = vmov 0.0|0.0  }
  0x39   :  { %797 = vmatprep.mubr.msk.f32.mxu1 %vm75_vm0, %v1091_v2  ;;  %v1095_v6 = vld [vmem:[#allocation2] sm:$0xff]  ;;  %v1097_v7 = vld [vmem:[#allocation2 + $0x8] sm:$0xff]  ;;  %v1099_v8 = vld [vmem:[#allocation2 + $0x10] sm:$0xff]  ;;  %v812_v16 = vpack.c.bf16 %v206_v5, %v205_v4  ;;  %vm218_vm4 = vcmask 1044484   ;;  %v223_v22 = vrot.slane %v1091_v2, 1  ;;  %vm221_vm5 = vcmask 1045509  }
  0x3a   :  { %814 = vmatprep.subr.bf16.mxu1 %v807_v3  ;;  %808 = vmatprep.subr.bf16.mxu0 %v807_v3  ;;  %v207_v9 = vrot.slane %v1095_v6, 7  ;;  %v208_v10 = vrot.slane %v1097_v7, 6  ;;  %v211_v11 = vrot.slane %v1099_v8, 5  ;;  %v1104_v12 = vld [vmem:[#allocation2 + $0x18] sm:$0xff]  ;;  %v1106_v13 = vld [vmem:[#allocation2 + $0x20] sm:$0xff]  ;;  %v1108_v14 = vld [vmem:[#allocation2 + $0x28] sm:$0xff] }
  0x3b   :  { %815 = vmatpush3.bf16.msra.mxu1 %v807_v3  ;;  %v1110_v15 = vld [vmem:[#allocation2 + $0x38] sm:$0xff]  ;;  %810 = vmatpush3.bf16.msra.mxu0 %v807_v3  ;;  %v214_v17 = vrot.slane %v1104_v12, 4  ;;  %v217_v18 = vrot.slane %v1106_v13, 3  ;;  %v220_v21 = vrot.slane %v1108_v14, 2  ;;  %vm224_vm6 = vcmask 1046534   ;;  %s1003_s12 = smov [#allocation8]  }
  0x3c   :  { %811 = vmatprep.subr.bf16.mxu1 %v998_v19  ;;  %788 = vmatprep.mubr.msk.f32.mxu0 %vm75_vm0, %v1095_v6  ;;  %v210_v20 = vsel %vm209_vm1, %v208_v10, %v207_v9  ;;  %vm999_vm7 = vmmov 0   ;;  %v1000_v25 = vmov 0.0   ;;  %vm226_vm8 = vcmask 1047559   ;;  %v769_v58 = vld [vmem:[%s1269_s3] ss:$0 sm:$0xff]  ;;  %s736_s13 = sshll.u32 %s1003_s12, 4  ;;  %s737_s13 = int_to_ptr.vmem [resolvable:$true] %s736_s13 }
  0x3d   :  { %v213_v23 = vsel %vm212_vm2, %v211_v11, %v210_v20  ;;  %v306_v31 = vshrl.u32 %v305_v30, 7  ;;  %v687_v32 = vand.u32 127, %v305_v30  ;;  %v1001_v34 = vmov 1966171168  }
  0x3e   :  { %798 = vmatmul.mubr.msk.f32.vlgmr.msra.gmra.mrb[0].mxu1 %vm75_vm0, %v1110_v15  ;;  %789 = vmatmul.mubr.msk.f32.vlgmr.msra.gmra.mrb[0].mxu0 %vm75_vm0, %v1097_v7  ;;  %v216_v24 = vsel %vm215_vm3, %v214_v17, %v213_v23  ;;  %v303_v35 = vunpack.c.l.s4 %v1001_v34  ;;  %vm436_vm9 = vcmask 261120   ;;  %vm728_vm10 = vcmask 64512  }
  0x3f   :  { %813 = vmatpush3.bf16.msra.mxu1 %v812_v16  ;;  %804 = vmatprep.mubr.msk.f32.mxu1 %vm999_vm7, %v1000_v25  ;;  %v219_v26 = vsel %vm218_vm4, %v217_v18, %v216_v24  ;;  %v1139_v33 = vsub.s32 %v687_v32, %v306_v31  ;;  %v352_v47 = vsub.s32 0, %v306_v31 }
  0x40   :  { %v222_v27 = vsel %vm221_vm5, %v220_v21, %v219_v26  ;;  %791 = vmatprep.mubr.msk.f32.mxu0 %vm75_vm0, %v1099_v8  ;;  %v304_v36 = vunpack.c.0.s8 %v303_v35 }
  0x41   :  { %v225_v28 = vsel %vm224_vm6, %v223_v22, %v222_v27 }
  0x42   :  { %v227_v29 = vsel %vm226_vm8, %v1110_v15, %v225_v28  ;;  %792 = vmatmul.mubr.msk.f32.gmra.mrb[2].mxu0 %vm75_vm0, %v1104_v12  ;;  %v307_v41 = vsub.s32 %v304_v36, %v306_v31  ;;  %v770_v31 = vld [vmem:[%s1270_s4] ss:$0 sm:$0xff]  ;;  %s1002_s4 = smov [#allocation9]  }
  0x43   :  { %805 = vmatmul.mubr.msk.f32.vlgmr.msra.gmra.mrb[2].mxu1 %vm75_vm0, %v227_v29  ;;  %794 = vmatprep.mubr.msk.f32.mxu0 %vm75_vm0, %v1106_v13  ;;  %s746_s11 = sshll.u32 %s1002_s4, 4  ;;  %s747_s11 = int_to_ptr.vmem [resolvable:$true] %s746_s11 }
  0x44   :  { %s941_s14 = scalar_lea.vmem %s747_s11, 128  ;;  %p946_p11 = scmp.lt.s32.totalorder %s747_s11, %s747_s11 }
  0x45   :  { %p942_p10 = scmp.ne.s32.totalorder %s747_s11, %s941_s14  ;;  %p947_p12 = scmp.lt.s32.totalorder %s941_s14, %s941_s14 }
  0x46   :  { %795 = vmatmul.mubr.msk.f32.gmra.mrb[4].mxu0 %vm75_vm0, %v1108_v14 }
  0x47   :  { %p948_p13 = por %p947_p12, %p946_p11 }
  0x49   :  { %p949_p0 = pnand %p948_p13, %p942_p10 }
 0x111   :  { %v799_v37 = vpop.f32.mrb[0].mxu1  ;;  %v790_v38 = vpop.f32.mrb[0].mxu0 }
 0x112   :  { %v196_v39 = vpop.f32.mrb[1].mxu1  ;;  %v166_v40 = vpop.f32.mrb[1].mxu0 }
 0x115   :  { %v793_v42 = vpop.f32.mrb[2].mxu0 }
 0x116   :  { %v296_v43 = vpop.f32.mrb[2].mxu1  ;;  %v176_v44 = vpop.f32.mrb[3].mxu0 }
 0x117   :  { %v301_v45 = vcombine.high %v296_v43, %v296_v43  ;;  %v308_v46 = vrot.slane %v296_v43, %v307_v41  ;;  %v806_v48 = vpop.f32.mrb[3].mxu1 }
 0x119   :  { %v315_v49 = vrot.slane %v301_v45, %v307_v41  ;;  %v316_v50 = vcombine.high %v308_v46, %v308_v46  ;;  %v324_v51 = vrot.slane %v308_v46, %v307_v41  ;;  %v796_v52 = vpop.f32.mrb[4].mxu0 }
 0x11a   :  { %v186_v53 = vpop.f32.mrb[5].mxu0 }
 0x11b   :  { %v317_v54 = vcombine.high %v315_v49, %v315_v49  ;;  %v338_v55 = vrot.slane %v316_v50, %v307_v41  ;;  %v353_v56 = vrot.slane %v324_v51, %v352_v47  ;;  %v346_v57 = vcombine.high %v324_v51, %v324_v51 }
 0x11c   :  { %v331_v59 = vrot.slane %v315_v49, %v307_v41 }
 0x11d   :  { %v357_v60 = vrot.slane %v338_v55, %v352_v47  ;;  %v390_v61 = vadd.f32 %v353_v56, %v166_v40  ;;  %v348_v62 = vcombine.high %v338_v55, %v338_v55  ;;  %v361_v63 = vrot.slane %v346_v57, %v352_v47 }
 0x11e   :  { %v345_v0 = vrot.slane %v317_v54, %v307_v41  ;;  %v347_v1 = vcombine.high %v331_v59, %v331_v59  ;;  %v369_v3 = vrot.slane %v331_v59, %v352_v47 }
 0x11f   :  { %v391_v4 = vadd.f32 %v790_v38, %v357_v60  ;;  %v405_v5 = vadd.f32 %v769_v58, %v390_v61  ;;  %v365_v9 = vrot.slane %v348_v62, %v352_v47  ;;  %v392_v10 = vadd.f32 %v361_v63, %v176_v44 }
 0x120   :  { %v349_v11 = vcombine.high %v345_v0, %v345_v0  ;;  %v373_v16 = vrot.slane %v345_v0, %v352_v47  ;;  %v377_v17 = vrot.slane %v347_v1, %v352_v47  ;;  %v394_v18 = vadd.f32 %v369_v3, %v186_v53 }
 0x121   :  { %v406_v19 = vadd.f32 %v769_v58, %v391_v4  ;;  %827 = vtanh.f32 %v405_v5  ;;  %v393_v20 = vadd.f32 %v793_v42, %v365_v9  ;;  %v407_v21 = vadd.f32 %v769_v58, %v392_v10 }
 0x122   :  { %v381_v22 = vrot.slane %v349_v11, %v352_v47  ;;  %v395_v23 = vadd.f32 %v796_v52, %v373_v16  ;;  %v396_v24 = vadd.f32 %v377_v17, %v196_v39  ;;  %v409_v26 = vadd.f32 %v769_v58, %v394_v18 }
 0x123   :  { %829 = vtanh.f32 %v406_v19  ;;  %v408_v25 = vadd.f32 %v769_v58, %v393_v20 }
 0x124   :  { %831 = vtanh.f32 %v407_v21  ;;  %v397_v27 = vadd.f32 %v799_v37, %v381_v22  ;;  %v410_v28 = vadd.f32 %v769_v58, %v395_v23  ;;  %v411_v29 = vadd.f32 %v769_v58, %v396_v24 }
 0x125   :  { %833 = vtanh.f32 %v408_v25 }
 0x126   :  { %835 = vtanh.f32 %v409_v26  ;;  %v412_v30 = vadd.f32 %v769_v58, %v397_v27 }
 0x127   :  { %837 = vtanh.f32 %v410_v28 }
 0x128   :  { %839 = vtanh.f32 %v411_v29 }
 0x129   :  { %841 = vtanh.f32 %v412_v30 }
 0x12b   :  { %v828_v32 = vpop.eup %827 }
 0x12c   :  { %v428_v34 = vmul.f32 %v828_v32, %v770_v31 }
 0x12d   :  { %v830_v35 = vpop.eup %829 }
 0x12e   :  { %v832_v36 = vpop.eup %831  ;;  %v437_v38 = vsel %vm436_vm9, %v428_v34, 0.0  ;;  %v429_v37 = vmul.f32 %v830_v35, %v770_v31 }
 0x12f   :  { %v834_v39 = vpop.eup %833  ;;  %438 = vadd.xlane.f32.xlu0 %v437_v38  ;;  %v430_v40 = vmul.f32 %v832_v36, %v770_v31 }
 0x130   :  { %v836_v41 = vpop.eup %835  ;;  %v431_v43 = vmul.f32 %v834_v39, %v770_v31  ;;  %v440_v45 = vsel %vm436_vm9, %v429_v37, 0.0 }
 0x131   :  { %v443_v42 = vsel %vm436_vm9, %v430_v40, 0.0  ;;  %v838_v44 = vpop.eup %837  ;;  %v432_v46 = vmul.f32 %v836_v41, %v770_v31 }
 0x132   :  { %444 = vadd.xlane.f32.xlu1 %v443_v42  ;;  %v840_v47 = vpop.eup %839  ;;  %v446_v48 = vsel %vm436_vm9, %v431_v43, 0.0  ;;  %v433_v49 = vmul.f32 %v838_v44, %v770_v31 }
 0x133   :  { %441 = vadd.xlane.f32.xlu0 %v440_v45  ;;  %v842_v50 = vpop.eup %841  ;;  %v449_v51 = vsel %vm436_vm9, %v432_v46, 0.0  ;;  %v434_v52 = vmul.f32 %v840_v47, %v770_v31 }
 0x134   :  { %v452_v53 = vsel %vm436_vm9, %v433_v49, 0.0  ;;  %v435_v54 = vmul.f32 %v842_v50, %v770_v31 }
 0x135   :  { %v455_v55 = vsel %vm436_vm9, %v434_v52, 0.0 }
 0x136   :  { %447 = vadd.xlane.f32.xlu1 %v446_v48  ;;  %v458_v56 = vsel %vm436_vm9, %v435_v54, 0.0 }
 0x137   :  { %450 = vadd.xlane.f32.xlu0 %v449_v51 }
 0x13a   :  { %453 = vadd.xlane.f32.xlu1 %v452_v53 }
 0x13b   :  { %456 = vadd.xlane.f32.xlu0 %v455_v55 }
 0x13e   :  { %459 = vadd.xlane.f32.xlu1 %v458_v56 }
 0x1bc   :  { %v439_v57 = vpop.xlane.xlu0 %438 }
 0x1bd   :  { %v461_v58 = vrot.slane %v439_v57, 4 }
 0x1bf   :  { %v462_v59 = vmax.f32 %v439_v57, %v461_v58  ;;  %v445_v60 = vpop.xlane.xlu1 %444 }
 0x1c0   :  { %v473_v61 = vrot.slane %v445_v60, 4  ;;  %v442_v62 = vpop.xlane.xlu0 %441 }
 0x1c1   :  { %v463_v63 = vrot.slane %v462_v59, 2  ;;  %v467_v0 = vrot.slane %v442_v62, 4 }
 0x1c2   :  { %v474_v1 = vmax.f32 %v445_v60, %v473_v61 }
 0x1c3   :  { %v464_v3 = vmax.f32 %v462_v59, %v463_v63  ;;  %v468_v4 = vmax.f32 %v442_v62, %v467_v0  ;;  %v448_v5 = vpop.xlane.xlu1 %447 }
 0x1c4   :  { %v475_v9 = vrot.slane %v474_v1, 2  ;;  %v479_v10 = vrot.slane %v448_v5, 4  ;;  %v451_v11 = vpop.xlane.xlu0 %450 }
 0x1c5   :  { %v465_v16 = vrot.slane %v464_v3, 1  ;;  %v469_v17 = vrot.slane %v468_v4, 2  ;;  %v485_v18 = vrot.slane %v451_v11, 4 }
 0x1c6   :  { %v476_v19 = vmax.f32 %v474_v1, %v475_v9  ;;  %v480_v20 = vmax.f32 %v448_v5, %v479_v10 }
 0x1c7   :  { %v466_v21 = vmax.f32 %v464_v3, %v465_v16  ;;  %v470_v22 = vmax.f32 %v468_v4, %v469_v17  ;;  %v486_v23 = vmax.f32 %v451_v11, %v485_v18  ;;  %v454_v24 = vpop.xlane.xlu1 %453 }
 0x1c8   :  { %v477_v25 = vrot.slane %v476_v19, 1  ;;  %v481_v26 = vrot.slane %v480_v20, 2  ;;  %v491_v27 = vrot.slane %v454_v24, 4  ;;  %v457_v28 = vpop.xlane.xlu0 %456 }
 0x1c9   :  { %v509_v29 = vsub.f32 %v439_v57, %v466_v21  ;;  %v471_v30 = vrot.slane %v470_v22, 1  ;;  %v487_v31 = vrot.slane %v486_v23, 2  ;;  %v497_v32 = vrot.slane %v457_v28, 4 }
 0x1ca   :  { %v478_v34 = vmax.f32 %v476_v19, %v477_v25  ;;  %v482_v35 = vmax.f32 %v480_v20, %v481_v26  ;;  %v492_v36 = vmax.f32 %v454_v24, %v491_v27 }
 0x1cb   :  { %v517_v38 = vmul.f32 1.442695, %v509_v29  ;;  %v472_v37 = vmax.f32 %v470_v22, %v471_v30  ;;  %v488_v39 = vmax.f32 %v486_v23, %v487_v31  ;;  %v498_v40 = vmax.f32 %v457_v28, %v497_v32  ;;  %v460_v41 = vpop.xlane.xlu1 %459 }
 0x1cc   :  { %v511_v42 = vsub.f32 %v445_v60, %v478_v34  ;;  %v483_v43 = vrot.slane %v482_v35, 1  ;;  %v493_v44 = vrot.slane %v492_v36, 2  ;;  %v503_v45 = vrot.slane %v460_v41, 4 }
 0x1cd   :  { %843 = vpow2.f32 %v517_v38  ;;  %v510_v46 = vsub.f32 %v442_v62, %v472_v37  ;;  %v489_v47 = vrot.slane %v488_v39, 1  ;;  %v499_v48 = vrot.slane %v498_v40, 2 }
 0x1ce   :  { %v521_v49 = vmul.f32 1.442695, %v511_v42  ;;  %v484_v50 = vmax.f32 %v482_v35, %v483_v43  ;;  %v494_v51 = vmax.f32 %v492_v36, %v493_v44  ;;  %v504_v52 = vmax.f32 %v460_v41, %v503_v45 }
 0x1cf   :  { %v519_v53 = vmul.f32 1.442695, %v510_v46  ;;  %v490_v54 = vmax.f32 %v488_v39, %v489_v47  ;;  %v500_v55 = vmax.f32 %v498_v40, %v499_v48 }
 0x1d0   :  { %845 = vpow2.f32 %v521_v49  ;;  %v512_v56 = vsub.f32 %v448_v5, %v484_v50  ;;  %v495_v57 = vrot.slane %v494_v51, 1  ;;  %v505_v58 = vrot.slane %v504_v52, 2 }
 0x1d1   :  { %847 = vpow2.f32 %v519_v53  ;;  %v513_v59 = vsub.f32 %v451_v11, %v490_v54  ;;  %v501_v60 = vrot.slane %v500_v55, 1 }
 0x1d2   :  { %v523_v61 = vmul.f32 1.442695, %v512_v56  ;;  %v496_v63 = vmax.f32 %v494_v51, %v495_v57  ;;  %v506_v0 = vmax.f32 %v504_v52, %v505_v58 }
 0x1d3   :  { %v525_v62 = vmul.f32 1.442695, %v513_v59  ;;  %v502_v1 = vmax.f32 %v500_v55, %v501_v60 }
 0x1d4   :  { %849 = vpow2.f32 %v523_v61  ;;  %v514_v3 = vsub.f32 %v454_v24, %v496_v63  ;;  %v507_v4 = vrot.slane %v506_v0, 1 }
 0x1d5   :  { %851 = vpow2.f32 %v525_v62  ;;  %v515_v9 = vsub.f32 %v457_v28, %v502_v1 }
 0x1d6   :  { %v527_v10 = vmul.f32 1.442695, %v514_v3  ;;  %v508_v16 = vmax.f32 %v506_v0, %v507_v4 }
 0x1d7   :  { %v1155_v17 = vpop.eup %843  ;;  %v529_v5 = vmul.f32 1.442695, %v515_v9 }
 0x1d8   :  { %v533_v18 = vrot.slane %v1155_v17, 4  ;;  %853 = vpow2.f32 %v527_v10  ;;  %v516_v11 = vsub.f32 %v460_v41, %v508_v16 }
 0x1d9   :  { %855 = vpow2.f32 %v529_v5 }
 0x1da   :  { %v1158_v19 = vpop.eup %845  ;;  %v534_v20 = vadd.f32 %v1155_v17, %v533_v18  ;;  %v531_v21 = vmul.f32 1.442695, %v516_v11 }
 0x1db   :  { %v1161_v22 = vpop.eup %847  ;;  %v545_v23 = vrot.slane %v1158_v19, 4 }
 0x1dc   :  { %v535_v24 = vrot.slane %v534_v20, 2  ;;  %v539_v25 = vrot.slane %v1161_v22, 4  ;;  %857 = vpow2.f32 %v531_v21 }
 0x1dd   :  { %v546_v26 = vadd.f32 %v1158_v19, %v545_v23 }
 0x1de   :  { %v1166_v27 = vpop.eup %849  ;;  %v536_v28 = vadd.f32 %v535_v24, %v534_v20  ;;  %v540_v29 = vadd.f32 %v1161_v22, %v539_v25 }
 0x1df   :  { %v1169_v30 = vpop.eup %851  ;;  %v547_v31 = vrot.slane %v546_v26, 2  ;;  %v551_v32 = vrot.slane %v1166_v27, 4 }
 0x1e0   :  { %v537_v34 = vrot.slane %v536_v28, 1  ;;  %v541_v35 = vrot.slane %v540_v29, 2  ;;  %v557_v36 = vrot.slane %v1169_v30, 4 }
 0x1e1   :  { %v548_v38 = vadd.f32 %v547_v31, %v546_v26  ;;  %v552_v37 = vadd.f32 %v1166_v27, %v551_v32 }
 0x1e2   :  { %v1174_v39 = vpop.eup %853  ;;  %v538_v40 = vadd.f32 %v537_v34, %v536_v28  ;;  %v542_v41 = vadd.f32 %v541_v35, %v540_v29  ;;  %v558_v42 = vadd.f32 %v1169_v30, %v557_v36 }
 0x1e3   :  { %v1177_v43 = vpop.eup %855  ;;  %v549_v44 = vrot.slane %v548_v38, 1  ;;  %v553_v45 = vrot.slane %v552_v37, 2  ;;  %v563_v46 = vrot.slane %v1174_v39, 4 }
 0x1e4   :  { %859 = vrcp.f32 %v538_v40  ;;  %v543_v47 = vrot.slane %v542_v41, 1  ;;  %v559_v48 = vrot.slane %v558_v42, 2  ;;  %v569_v49 = vrot.slane %v1177_v43, 4 }
 0x1e5   :  { %v550_v50 = vadd.f32 %v549_v44, %v548_v38  ;;  %v554_v51 = vadd.f32 %v553_v45, %v552_v37  ;;  %v564_v52 = vadd.f32 %v1174_v39, %v563_v46 }
 0x1e6   :  { %v1182_v53 = vpop.eup %857  ;;  %v544_v54 = vadd.f32 %v543_v47, %v542_v41  ;;  %v560_v55 = vadd.f32 %v559_v48, %v558_v42  ;;  %v570_v56 = vadd.f32 %v1177_v43, %v569_v49 }
 0x1e7   :  { %861 = vrcp.f32 %v550_v50  ;;  %v555_v57 = vrot.slane %v554_v51, 1  ;;  %v565_v58 = vrot.slane %v564_v52, 2  ;;  %v575_v59 = vrot.slane %v1182_v53, 4 }
 0x1e8   :  { %863 = vrcp.f32 %v544_v54  ;;  %v561_v60 = vrot.slane %v560_v55, 1  ;;  %v571_v61 = vrot.slane %v570_v56, 2 }
 0x1e9   :  { %v556_v63 = vadd.f32 %v555_v57, %v554_v51  ;;  %v566_v0 = vadd.f32 %v565_v58, %v564_v52  ;;  %v576_v62 = vadd.f32 %v1182_v53, %v575_v59 }
 0x1ea   :  { %v562_v1 = vadd.f32 %v561_v60, %v560_v55  ;;  %v572_v3 = vadd.f32 %v571_v61, %v570_v56 }
 0x1eb   :  { %865 = vrcp.f32 %v556_v63  ;;  %v567_v4 = vrot.slane %v566_v0, 1  ;;  %v577_v9 = vrot.slane %v576_v62, 2 }
 0x1ec   :  { %867 = vrcp.f32 %v562_v1  ;;  %v573_v10 = vrot.slane %v572_v3, 1 }
 0x1ed   :  { %v568_v16 = vadd.f32 %v567_v4, %v566_v0  ;;  %v578_v5 = vadd.f32 %v577_v9, %v576_v62 }
 0x1ee   :  { %v860_v18 = vpop.eup %859  ;;  %v574_v11 = vadd.f32 %v573_v10, %v572_v3 }
 0x1ef   :  { %v582_v20 = vmul.f32 %v860_v18, %v1155_v17  ;;  %v579_v21 = vrot.slane %v578_v5, 1  ;;  %869 = vrcp.f32 %v568_v16 }
 0x1f0   :  { %871 = vrcp.f32 %v574_v11 }
 0x1f1   :  { %v862_v23 = vpop.eup %861  ;;  %v580_v24 = vadd.f32 %v579_v21, %v578_v5  ;;  %v597_v25 = vmul.f32 %v582_v20, %v1095_v6  ;;  %v691_v36 = vrot.slane %v582_v20, %v1139_v33 }
 0x1f2   :  { %v864_v26 = vpop.eup %863  ;;  %v586_v28 = vmul.f32 %v862_v23, %v1158_v19 }
 0x1f3   :  { %v584_v29 = vmul.f32 %v864_v26, %v1161_v22  ;;  %873 = vrcp.f32 %v580_v24  ;;  %v605_v31 = vsel %vm75_vm0, %v597_v25, 0.0 }
 0x1f4   :  { %v599_v32 = vmul.f32 %v586_v28, %v1099_v8  ;;  %v606_v34 = vrot.slane %v605_v31, 4  ;;  %v699_v40 = vrot.slane %v586_v28, %v1139_v33 }
 0x1f5   :  { %v866_v35 = vpop.eup %865  ;;  %v598_v17 = vmul.f32 %v584_v29, %v1097_v7  ;;  %v695_v38 = vrot.slane %v584_v29, %v1139_v33 }
 0x1f6   :  { %v868_v37 = vpop.eup %867  ;;  %v1197_v6 = vmul.f32 %v866_v35, %v1166_v27  ;;  %v607_v19 = vadd.f32 %v606_v34, %v605_v31  ;;  %v619_v22 = vsel %vm75_vm0, %v599_v32, 0.0 }
 0x1f7   :  { %v1202_v41 = vmul.f32 %v868_v37, %v1169_v30  ;;  %v612_v8 = vsel %vm75_vm0, %v598_v17, 0.0  ;;  %v620_v42 = vrot.slane %v619_v22, 4  ;;  %v720_v7 = vsel %vm209_vm1, %v695_v38, %v691_v36 }
 0x1f8   :  { %v600_v44 = vmul.f32 %v1197_v6, %v1104_v12  ;;  %v608_v45 = vrot.slane %v607_v19, 2  ;;  %v613_v46 = vrot.slane %v612_v8, 4  ;;  %v703_v27 = vrot.slane %v1197_v6, %v1139_v33 }
 0x1f9   :  { %v870_v47 = vpop.eup %869  ;;  %v601_v48 = vmul.f32 %v1202_v41, %v1106_v13  ;;  %v621_v49 = vadd.f32 %v620_v42, %v619_v22  ;;  %v707_v30 = vrot.slane %v1202_v41, %v1139_v33  ;;  %v721_v50 = vsel %vm212_vm2, %v699_v40, %v720_v7 }
 0x1fa   :  { %v872_v51 = vpop.eup %871  ;;  %v592_v52 = vmul.f32 %v870_v47, %v1174_v39  ;;  %v609_v54 = vadd.f32 %v608_v45, %v607_v19  ;;  %v614_v12 = vadd.f32 %v613_v46, %v612_v8  ;;  %v626_v55 = vsel %vm75_vm0, %v600_v44, 0.0 }
 0x1fb   :  { %v594_v56 = vmul.f32 %v872_v51, %v1177_v43  ;;  %v622_v57 = vrot.slane %v621_v49, 2  ;;  %v627_v58 = vrot.slane %v626_v55, 4  ;;  %v633_v59 = vsel %vm75_vm0, %v601_v48, 0.0 }
 0x1fc   :  { %v602_v13 = vmul.f32 %v592_v52, %v1108_v14  ;;  %v610_v60 = vrot.slane %v609_v54, 1  ;;  %v615_v61 = vrot.slane %v614_v12, 2  ;;  %v634_v63 = vrot.slane %v633_v59, 4 }
 0x1fd   :  { %v874_v0 = vpop.eup %873  ;;  %v603_v62 = vmul.f32 %v594_v56, %v1091_v2  ;;  %v623_v1 = vadd.f32 %v622_v57, %v621_v49  ;;  %v628_v39 = vadd.f32 %v627_v58, %v626_v55  ;;  %v711_v3 = vrot.slane %v592_v52, %v1139_v33 }
 0x1fe   :  { %v596_v4 = vmul.f32 %v874_v0, %v1182_v53  ;;  %v611_v9 = vadd.f32 %v610_v60, %v609_v54  ;;  %v616_v43 = vadd.f32 %v615_v61, %v614_v12  ;;  %v635_v10 = vadd.f32 %v634_v63, %v633_v59 }
 0x1ff   :  { %v624_v16 = vrot.slane %v623_v1, 1  ;;  %v629_v5 = vrot.slane %v628_v39, 2  ;;  %v640_v18 = vsel %vm75_vm0, %v602_v13, 0.0  ;;  %v647_v14 = vsel %vm75_vm0, %v603_v62, 0.0 }
 0x200   :  { %v604_v11 = vmul.f32 %v596_v4, %v1110_v15  ;;  %v617_v20 = vrot.slane %v616_v43, 1  ;;  %v636_v21 = vrot.slane %v635_v10, 2  ;;  %v641_v2 = vrot.slane %v640_v18, 4 }
 0x201   :  { %v625_v23 = vadd.f32 %v624_v16, %v623_v1  ;;  %v630_v24 = vadd.f32 %v629_v5, %v628_v39  ;;  %v648_v25 = vrot.slane %v647_v14, 4  ;;  %v715_v26 = vrot.slane %v594_v56, %v1139_v33 }
 0x202   :  { %v618_v53 = vadd.f32 %v617_v20, %v616_v43  ;;  %v637_v28 = vadd.f32 %v636_v21, %v635_v10  ;;  %v642_v29 = vadd.f32 %v641_v2, %v640_v18  ;;  %v654_v31 = vsel %vm75_vm0, %v604_v11, 0.0 }
 0x203   :  { %v631_v32 = vrot.slane %v630_v24, 1  ;;  %v649_v34 = vadd.f32 %v648_v25, %v647_v14  ;;  %v655_v35 = vrot.slane %v654_v31, 4  ;;  %v719_v17 = vrot.slane %v596_v4, %v1139_v33 }
 0x204   :  { %v638_v36 = vrot.slane %v637_v28, 1  ;;  %v643_v15 = vrot.slane %v642_v29, 2  ;;  %v669_v38 = vsel %vm209_vm1, %v618_v53, %v611_v9  ;;  %v722_v37 = vsel %vm215_vm3, %v703_v27, %v721_v50 }
 0x205   :  { %v632_v6 = vadd.f32 %v631_v32, %v630_v24  ;;  %v650_v19 = vrot.slane %v649_v34, 2  ;;  %v656_v22 = vadd.f32 %v655_v35, %v654_v31  ;;  %v670_v40 = vsel %vm212_vm2, %v625_v23, %v669_v38 }
 0x206   :  { %v639_v41 = vadd.f32 %v638_v36, %v637_v28  ;;  %v644_v8 = vadd.f32 %v643_v15, %v642_v29  ;;  %v723_v42 = vsel %vm218_vm4, %v707_v30, %v722_v37 }
 0x207   :  { %v651_v7 = vadd.f32 %v650_v19, %v649_v34  ;;  %v657_v33 = vrot.slane %v656_v22, 2  ;;  %v671_v44 = vsel %vm215_vm3, %v632_v6, %v670_v40  ;;  %v724_v45 = vsel %vm221_vm5, %v711_v3, %v723_v42 }
 0x208   :  { %v645_v46 = vrot.slane %v644_v8, 1  ;;  %v725_v27 = vsel %vm224_vm6, %v715_v26, %v724_v45  ;;  %v672_v49 = vsel %vm218_vm4, %v639_v41, %v671_v44 }
 0x209   :  { %v652_v47 = vrot.slane %v651_v7, 1  ;;  %v658_v48 = vadd.f32 %v657_v33, %v656_v22  ;;  %v726_v50 = vsel %vm226_vm8, %v719_v17, %v725_v27 }
 0x20a   :  { %v646_v51 = vadd.f32 %v645_v46, %v644_v8  ;;  %729 = vst.msk [vmem:[#allocation9] sm:$0xff] %vm728_vm10, %v726_v50 }
 0x20b   :  { %v653_v30 = vadd.f32 %v652_v47, %v651_v7  ;;  %v659_v52 = vrot.slane %v658_v48, 1 }
 0x20c   :  { %952 = shalt.err (!%p949_p0)
}
 0x20d   :  { %s953_s17 = scalar_lea.hbm %s1272_s6, 128 }
 0x20e   :  { %p954_p1 = scmp.ne.s32.totalorder %s1272_s6, %s953_s17  ;;  %p957_p2 = scmp.lt.u32.totalorder %s953_s17, %s1272_s6 }
 0x210   :  { %p959_p3 = pnand %p957_p2, %p954_p1 }
 0x212   :  { %962 = shalt.err (!%p959_p3)
}
 0x213   :  { %749 = dma.vmem_to_hbm [thread:$0]  %s747_s11, 128, %s1272_s6, [#allocation10]   ;;  %v673_v54 = vsel %vm221_vm5, %v646_v51, %v672_v49  ;;  %v660_v12 = vadd.f32 %v659_v52, %v658_v48 }
 0x214   :  { %v674_v55 = vsel %vm224_vm6, %v653_v30, %v673_v54  ;;  %s963_s23 = scalar_lea.vmem %s737_s13, 128  ;;  %p968_p5 = scmp.lt.s32.totalorder %s737_s13, %s737_s13 }
 0x215   :  { %v675_v56 = vsel %vm226_vm8, %v660_v12, %v674_v55  ;;  %p964_p4 = scmp.ne.s32.totalorder %s737_s13, %s963_s23  ;;  %p969_p6 = scmp.lt.s32.totalorder %s963_s23, %s963_s23 }
 0x216   :  { %677 = vst.msk [vmem:[#allocation8] sm:$0xff] %vm75_vm0, %v675_v56 }
 0x217   :  { %p970_p7 = por %p969_p6, %p968_p5 }
 0x219   :  { %p971_p8 = pnand %p970_p7, %p964_p4 }
 0x21b   :  { %974 = shalt.err (!%p971_p8)
}
 0x21c   :  { %s975_s6 = scalar_lea.hbm %s1271_s5, 128 }
 0x21d   :  { %p976_p9 = scmp.ne.s32.totalorder %s1271_s5, %s975_s6  ;;  %p979_p10 = scmp.lt.u32.totalorder %s975_s6, %s1271_s5 }
 0x21f   :  { %p981_p11 = pnand %p979_p10, %p976_p9 }
 0x221   :  { %984 = shalt.err (!%p981_p11)
}
 0x222   :  { %739 = dma.vmem_to_hbm [thread:$0]  %s737_s13, 128, %s1271_s5, [#allocation4]  }
 0x223   :  { %989 = dma.done.wait [#allocation4], 128  }
 0x224   :  { %990 = vsyncadd [#allocation4], 4294967168 }
 0x225   :  { %991 = dma.done.wait [#allocation10], 128  }
 0x226   :  { %992 = vsyncadd [#allocation10], 4294967168 }
 0x227   :  { %756 = vsyncpa [#allocation3], 1 }
 0x228   :  { %757 = vsyncpa [#allocation6], 1 }
 0x229   :  { %758 = vsyncpa [#allocation4], 1 }
 0x22a   :  { %759 = vsyncpa [#allocation10], 1 }

</bundles_post_ra>
